<compile_context>
chip_gen: v5e
topology: v5e:2x2
jax: 0.10.0
libtpu: 0.0.40
codegen_flags: <defaults>
</compile_context>

<pallas_src>
import functools

import jax
import jax.numpy as jnp
from jax.experimental import pallas as pl
from jax.experimental.pallas import tpu as pltpu

LANE = 128
DEFAULT_BLOCK_ROWS = 4096   # (4096, 128) f32 block = 2 MiB per input per buffer
N_SPLIT = 2                 # parallel grid axis: megacore split on v7x, loop of 2 elsewhere


def _round_up(v, m):
    return -(-v // m) * m


def _wmse_kernel(x_ref, t_ref, o_ref, acc_ref, *, weight, rows_valid,
                 block_rows, steps_per_core, needs_mask):
    c = pl.program_id(0)   # parallel slice (TensorCore on v7x)
    i = pl.program_id(1)   # reduction step within the slice

    @pl.when(i == 0)
    def _():
        acc_ref[...] = jnp.zeros_like(acc_ref)

    # Per-tile upcast (inputs stay in native dtype in HBM / VMEM).
    x = x_ref[...].astype(jnp.float32)
    t = t_ref[...].astype(jnp.float32)

    w = 1.0 + (2.0 * t - 1.0) ** 2 * weight
    diff = x - t
    loss = w * diff * diff

    if needs_mask:
        # Zero rows beyond the valid range: covers (a) the partial boundary
        # block (uninitialized VMEM garbage past the array end) and (b)
        # duplicate blocks produced by clamping out-of-range block indices.
        start = (c * steps_per_core + i) * block_rows
        row_ids = jax.lax.broadcasted_iota(jnp.int32, loss.shape, 0) + start
        loss = jnp.where(row_ids < rows_valid, loss, 0.0)

    # Vector accumulation: reduce only the sublane axis per step (no per-step
    # cross-lane reduce, no per-step masked scalar store).
    acc_ref[...] += jnp.sum(loss, axis=0, keepdims=True)

    # Finalize this slice: a single unmasked lane-dense (1, 128) store.  The
    # cross-lane combine of N_SPLIT*128 partials happens in the wrapper.
    @pl.when(i == pl.num_programs(1) - 1)
    def _():
        o_ref[...] = acc_ref[...].reshape(o_ref.shape)


def weighted_mse_loss(x, t, weight=1.0, block_rows=DEFAULT_BLOCK_ROWS):
    assert x.shape == t.shape, "input/target must have identical shapes"
    n = x.size
    assert n > 0, "empty input"

    # Flatten in native dtype (layout-only; no f32 copy in HBM).
    xf = jnp.ravel(x)
    tf = jnp.ravel(t)

    rem = n % LANE
    if rem:
        # Ragged tail (< 128 elems): pad flat views up to a lane multiple.
        # Zero padding is loss-neutral ((0-0)^2 * 2 == 0 ... weights*0 == 0).
        # This branch costs one copy; shapes with n % 128 == 0 are copy-free.
        xf = jnp.pad(xf, (0, LANE - rem))
        tf = jnp.pad(tf, (0, LANE - rem))

    rows = xf.size // LANE
    x2 = xf.reshape(rows, LANE)
    t2 = tf.reshape(rows, LANE)

    # Block sizing: big lane-dense tiles, shrunk for small inputs and capped
    # at ceil(rows / N_SPLIT) so both cores get work on v7x.  Keep a multiple
    # of 32 so sublane packing works for 32/16/8-bit dtypes.
    rows_per_core = -(-rows // N_SPLIT)
    block_rows = max(32, min(_round_up(block_rows, 32), _round_up(rows_per_core, 32)))

    steps = -(-rows // block_rows)           # blocks needed to cover all rows
    steps_per_core = -(-steps // N_SPLIT)    # blocks per parallel slice
    last_block = steps - 1
    # Static: do we ever touch rows past the valid range (partial boundary
    # block and/or clamped duplicate blocks)?
    needs_mask = (N_SPLIT * steps_per_core * block_rows) != rows

    def in_index(c, i):
        # Clamp so blocks past the end (from rounding steps up to a multiple
        # of N_SPLIT) re-read the last valid block; the in-kernel row mask
        # zeroes their contribution.
        return (jnp.minimum(c * steps_per_core + i, last_block), 0)

    # TODO(synk): weight / n are baked in statically (recompile per distinct
    # value); pass via scalar prefetch if they vary at runtime.
    kernel = functools.partial(
        _wmse_kernel,
        weight=float(weight),
        rows_valid=rows,
        block_rows=block_rows,
        steps_per_core=steps_per_core,
        needs_mask=needs_mask,
    )

    partials = pl.pallas_call(
        kernel,
        out_shape=jax.ShapeDtypeStruct((N_SPLIT, 1, LANE), jnp.float32),
        grid_spec=pltpu.PrefetchScalarGridSpec(
            num_scalar_prefetch=0,
            grid=(N_SPLIT, steps_per_core),
            in_specs=[
                pl.BlockSpec((block_rows, LANE), in_index),
                pl.BlockSpec((block_rows, LANE), in_index),
            ],
            out_specs=pl.BlockSpec((1, 1, LANE), lambda c, i: (c, 0, 0)),
            scratch_shapes=[pltpu.VMEM((1, LANE), jnp.float32)],
        ),
        compiler_params=pltpu.CompilerParams(
            dimension_semantics=("parallel", "arbitrary"),
        ),
    )(x2, t2)

    # Combine the tiny per-slice lane partial sums and normalize by the true
    # element count.
    return jnp.sum(partials) / jnp.float32(n)


def weighted_mse_loss_ref(x, t, weight=1.0):
    x = x.astype(jnp.float32)
    t = t.astype(jnp.float32)
    w = 1.0 + (2.0 * t - 1.0) ** 2 * weight
    return jnp.mean(w * (x - t) ** 2)


if __name__ == "__main__":
    key = jax.random.PRNGKey(0)
    k1, k2, k3, k4, k5, k6 = jax.random.split(key, 6)

    # Small NCHW-shaped inputs consistent with a segmentation-style use.
    B, C, H, W = 2, 4, 16, 16
    x = jax.random.uniform(k1, (B, C, H, W), dtype=jnp.float32)
    t = (jax.random.uniform(k2, (B, C, H, W)) > 0.5).astype(jnp.float32)

    weight = 1.0
    loss = jax.block_until_ready(weighted_mse_loss(x, t, weight=weight))
    ref = weighted_mse_loss_ref(x, t, weight=weight)
    assert jnp.allclose(loss, ref, rtol=1e-5, atol=1e-6), (loss, ref)

    # Ragged element count (n % 128 != 0) exercises the tail-pad + mask path.
    xr = jax.random.uniform(k3, (3, 5, 7), dtype=jnp.float32)
    tr = jax.random.uniform(k4, (3, 5, 7), dtype=jnp.float32)
    loss_r = jax.block_until_ready(weighted_mse_loss(xr, tr, weight=0.5))
    ref_r = weighted_mse_loss_ref(xr, tr, weight=0.5)
    assert jnp.allclose(loss_r, ref_r, rtol=1e-5, atol=1e-6), (loss_r, ref_r)

    # bf16 inputs exercise the native-dtype streaming + in-kernel upcast path.
    xb = jax.random.uniform(k5, (4, 8, 32), dtype=jnp.float32).astype(jnp.bfloat16)
    tb = (jax.random.uniform(k6, (4, 8, 32)) > 0.5).astype(jnp.bfloat16)
    loss_b = jax.block_until_ready(weighted_mse_loss(xb, tb, weight=2.0))
    ref_b = weighted_mse_loss_ref(xb, tb, weight=2.0)
    assert jnp.allclose(loss_b, ref_b, rtol=1e-3, atol=1e-5), (loss_b, ref_b)

    print("KERNEL_OK")
</pallas_src>

<mosaic_0001>
module attributes {stable_mosaic.version = 11 : i64} {
  func.func @_wmse_kernel(%arg0: i32, %arg1: i32, %arg2: memref<32x128xf32, #tpu.memory_space<vmem>>, %arg3: memref<32x128xf32, #tpu.memory_space<vmem>>, %arg4: memref<1x1x128xf32, #tpu.memory_space<vmem>>, %arg5: memref<1x128xf32, #tpu.memory_space<vmem>>) attributes {dimension_semantics = [#tpu.dimension_semantics<parallel>, #tpu.dimension_semantics<arbitrary>], iteration_bounds = array<i64: 2, 1>, scalar_prefetch = 0 : i64, scratch_operands = 1 : i64, tpu.core_type = #tpu.core_type<tc>, window_params = [{transform_indices = @transform_0, window_bounds = array<i64: 32, 128>}, {transform_indices = @transform_1, window_bounds = array<i64: 32, 128>}, {transform_indices = @transform_2, window_bounds = array<i64: 1, 1, 128>}]} {
    %c0_i32 = arith.constant 0 : i32
    %0 = arith.cmpi eq, %arg1, %c0_i32 : i32
    %1 = arith.extui %0 : i1 to i32
    %c0_i32_0 = arith.constant 0 : i32
    %2 = arith.cmpi ne, %1, %c0_i32_0 : i32
    scf.if %2 {
      %cst_15 = arith.constant 0.000000e+00 : f32
      %35 = vector.broadcast %cst_15 : f32 to vector<1x128xf32>
      %c0_16 = arith.constant 0 : index
      %c0_17 = arith.constant 0 : index
      %36 = vector.load %arg5[%c0_16, %c0_17] : memref<1x128xf32, #tpu.memory_space<vmem>>, vector<1x128xf32>
      tpu.vector_store %arg5[%c0_16, %c0_17], %35 {strides = array<i32>} : memref<1x128xf32, #tpu.memory_space<vmem>>, vector<1x128xf32>,
    } else {
    }
    %c0 = arith.constant 0 : index
    %c0_1 = arith.constant 0 : index
    %3 = vector.load %arg2[%c0, %c0_1] : memref<32x128xf32, #tpu.memory_space<vmem>>, vector<32x128xf32>
    %c0_2 = arith.constant 0 : index
    %c0_3 = arith.constant 0 : index
    %4 = vector.load %arg3[%c0_2, %c0_3] : memref<32x128xf32, #tpu.memory_space<vmem>>, vector<32x128xf32>
    %cst = arith.constant 2.000000e+00 : f32
    %5 = vector.broadcast %cst : f32 to vector<32x128xf32>
    %6 = arith.mulf %5, %4 : vector<32x128xf32>
    %cst_4 = arith.constant 1.000000e+00 : f32
    %7 = vector.broadcast %cst_4 : f32 to vector<32x128xf32>
    %8 = arith.subf %6, %7 : vector<32x128xf32>
    %9 = arith.mulf %8, %8 : vector<32x128xf32>
    %cst_5 = arith.constant 1.000000e+00 : f32
    %10 = vector.broadcast %cst_5 : f32 to vector<32x128xf32>
    %11 = arith.mulf %9, %10 : vector<32x128xf32>
    %cst_6 = arith.constant 1.000000e+00 : f32
    %12 = vector.broadcast %cst_6 : f32 to vector<32x128xf32>
    %13 = arith.addf %12, %11 : vector<32x128xf32>
    %14 = arith.subf %3, %4 : vector<32x128xf32>
    %15 = arith.mulf %13, %14 : vector<32x128xf32>
    %16 = arith.mulf %15, %14 : vector<32x128xf32>
    %c1_i32 = arith.constant 1 : i32
    %17 = arith.muli %arg0, %c1_i32 : i32
    %18 = arith.addi %17, %arg1 : i32
    %c32_i32 = arith.constant 32 : i32
    %19 = arith.muli %18, %c32_i32 : i32
    %20 = tpu.iota {dimensions = array<i32: 0>} : vector<32x128xi32>
    %21 = vector.broadcast %19 : i32 to vector<32x128xi32>
    %22 = arith.addi %20, %21 : vector<32x128xi32>
    %c16_i32 = arith.constant 16 : i32
    %23 = vector.broadcast %c16_i32 : i32 to vector<32x128xi32>
    %24 = arith.cmpi slt, %22, %23 : vector<32x128xi32>
    %cst_7 = arith.constant 0.000000e+00 : f32
    %25 = vector.broadcast %cst_7 : f32 to vector<32x128xf32>
    %26 = arith.select %24, %16, %25 : vector<32x128xi1>, vector<32x128xf32>
    %c0_8 = arith.constant 0 : index
    %c0_9 = arith.constant 0 : index
    %27 = vector.load %arg5[%c0_8, %c0_9] : memref<1x128xf32, #tpu.memory_space<vmem>>, vector<1x128xf32>
    %cst_10 = arith.constant dense<0.000000e+00> : vector<128xf32>
    %28 = vector.multi_reduction <add>, %26, %cst_10 [0] : vector<32x128xf32> to vector<128xf32>
    %29 = vector.shape_cast %28 : vector<128xf32> to vector<1x128xf32>
    %30 = arith.addf %27, %29 : vector<1x128xf32>
    %c0_11 = arith.constant 0 : index
    %c0_12 = arith.constant 0 : index
    %31 = vector.load %arg5[%c0_11, %c0_12] : memref<1x128xf32, #tpu.memory_space<vmem>>, vector<1x128xf32>
    tpu.vector_store %arg5[%c0_11, %c0_12], %30 {strides = array<i32>} : memref<1x128xf32, #tpu.memory_space<vmem>>, vector<1x128xf32>,
    %c0_i32_13 = arith.constant 0 : i32
    %32 = arith.cmpi eq, %arg1, %c0_i32_13 : i32
    %33 = arith.extui %32 : i1 to i32
    %c0_i32_14 = arith.constant 0 : i32
    %34 = arith.cmpi ne, %33, %c0_i32_14 : i32
    scf.if %34 {
      %c0_15 = arith.constant 0 : index
      %c0_16 = arith.constant 0 : index
      %35 = vector.load %arg5[%c0_15, %c0_16] : memref<1x128xf32, #tpu.memory_space<vmem>>, vector<1x128xf32>
      %36 = vector.shape_cast %35 : vector<1x128xf32> to vector<1x1x128xf32>
      %c0_17 = arith.constant 0 : index
      %c0_18 = arith.constant 0 : index
      %c0_19 = arith.constant 0 : index
      %37 = vector.load %arg4[%c0_17, %c0_18, %c0_19] : memref<1x1x128xf32, #tpu.memory_space<vmem>>, vector<1x1x128xf32>
      tpu.vector_store %arg4[%c0_17, %c0_18, %c0_19], %36 {strides = array<i32>} : memref<1x1x128xf32, #tpu.memory_space<vmem>>, vector<1x1x128xf32>,
    } else {
    }
    return
  }
  func.func @transform_0(%arg0: i32, %arg1: i32) -> (i32, i32) {
    %c1_i32 = arith.constant 1 : i32
    %0 = arith.muli %arg0, %c1_i32 : i32
    %1 = arith.addi %0, %arg1 : i32
    %c0_i32 = arith.constant 0 : i32
    %2 = arith.minsi %1, %c0_i32 : i32
    %c0_i32_0 = arith.constant 0 : i32
    %c0_i32_1 = arith.constant 0 : i32
    return %2, %c0_i32_0 : i32, i32
  }
  func.func @transform_1(%arg0: i32, %arg1: i32) -> (i32, i32) {
    %c1_i32 = arith.constant 1 : i32
    %0 = arith.muli %arg0, %c1_i32 : i32
    %1 = arith.addi %0, %arg1 : i32
    %c0_i32 = arith.constant 0 : i32
    %2 = arith.minsi %1, %c0_i32 : i32
    %c0_i32_0 = arith.constant 0 : i32
    %c0_i32_1 = arith.constant 0 : i32
    return %2, %c0_i32_0 : i32, i32
  }
  func.func @transform_2(%arg0: i32, %arg1: i32) -> (i32, i32, i32) {
    %c0_i32 = arith.constant 0 : i32
    %c0_i32_0 = arith.constant 0 : i32
    %c0_i32_1 = arith.constant 0 : i32
    return %arg0, %c0_i32, %c0_i32_0 : i32, i32, i32
  }
}

</mosaic_0001>

<bundles_post_ra>
// kernel: tpu_custom_call.1
= control target key start
LH: loop header
LB: loop body
LE: loop exit
PB: predicated region body
PF: predicated region fallthrough
CT: control target
= control target key end

     0   :  { %7 = vsyncpa [#allocation4], 0  ;;  %s920_s0 = inlined_call_operand.hbm [shape: f32[16,128], index: 0, kind: input, shape index: {}]   ;;  %s921_s1 = inlined_call_operand.hbm [shape: f32[16,128], index: 1, kind: input, shape index: {}]   ;;  %s922_s2 = inlined_call_operand.hbm [shape: f32[2,1,128], index: 2, kind: output, shape index: {}]  }
   0x1   :  { %9 = vsyncpa [#allocation4 + $0x1], 0 }
   0x2   :  { %10 = vsyncpa [#allocation7], 0 }
   0x3   :  { %12 = vsyncpa [#allocation7 + $0x1], 0 }
   0x4   :  { %13 = vsyncpa [#allocation5], 0 }
   0x5   :  { %15 = vsyncpa [#allocation5 + $0x1], 0  ;;  %s774_s9 = smov 0   ;;  %s776_s10 = smov 0  }
   0x6   :  { %s778_s11 = smov 0   ;;  %s780_s12 = smov 0  }
   0x7   :  { %s782_s13 = smov 0   ;;  %s784_s14 = smov 0  }
   0x8   :  { %s786_s15 = smov 0   ;;  %s788_s16 = smov 0  }
   0x9 LB: > { %s445_s17 = sadd.s32 4294967295, %s750_s16   ;;  %s446_s18 = sadd.s32 4294967294, %s750_s16   ;;  %s750_s16 = sphi %s788_s16, %s21_s16   ;;  %s746_s15 = sphi %s786_s15, %s932_s15   ;;  %s742_s14 = sphi %s784_s14, %s931_s14   ;;  %s738_s13 = sphi %s782_s13, %s910_s13   ;;  %s734_s12 = sphi %s780_s12, %s930_s12   ;;  %s730_s11 = sphi %s778_s11, %s929_s11   ;;  %s726_s10 = sphi %s776_s10, %s928_s10   ;;  %s722_s9 = sphi %s774_s9, %s927_s9  }
   0xa   : > { %s33_s19 = sadd.s32 1, %s746_s15  ;;  %p719_p1 = scmp.ne.s32.totalorder %s738_s13, 0 }
   0xb   : > { %p35_p0 = scmp.ge.s32.totalorder %s33_s19, 2  ;;  %p54_p2 = scmp.eq.s32.totalorder %s750_s16, 0 }
   0xc   : > { %p59_p3 = scmp.ne.s32.totalorder %s738_s13, %s734_s12  ;;  %p60_p5 = scmp.eq.s32.totalorder %s445_s17, 0 }
   0xd   : > { %s934_s19 = smov (%p35_p0, %s33_s19), 0  ;;  %p820_p4 = por %p719_p1, %p54_p2 }
   0xe   : > { %p824_p6 = por %p60_p5, %p59_p3  ;;  %s101_s22 = ssub.s32 %s746_s15, %s934_s19 }
   0xf   : > { %p102_p7 = scmp.eq.s32.totalorder %s101_s22, 0  ;;  %s104_s23 = sadd.s32 1, %s730_s11 }
  0x10   : > { %p114_p8 = scmp.ne.s32.totalorder %s730_s11, %s726_s10  ;;  %p115_p9 = scmp.eq.s32.totalorder %s445_s17, 1 }
  0x11   : > { %s832_s24 = scalar_select %p102_p7, %s730_s11, %s104_s23  }
  0x12   : > { %p120_p10 = scmp.ne.s32.totalorder %s726_s10, %s722_s9  ;;  %p121_p11 = scmp.eq.s32.totalorder %s446_s18, 1 }
  0x13   : > { %p838_p12 = por %p115_p9, %p114_p8  ;;  %p448_p0 = scmp.ge.s32.totalorder %s750_s16, 2 }
  0x14   : > { %p842_p13 = por %p121_p11, %p120_p10 }
  0x15   : > { %137 = sbr.rel (%p448_p0) target bundleno = 70 (0x46), region = 16 }
  0x1a   : > { %140 = sbr.rel (!%p820_p4) target bundleno = 48 (0x30), region = 20 }
  0x1f   : > { %154 = vsyncadd [#allocation4], 256  ;;  %s752_s27 = smov [#allocation3]   ;;  %s159_s3 = sshll.u32 %s920_s0, 4  ;;  %s160_s3 = int_to_ptr.hbm [resolvable:$true] %s159_s3 }
  0x20   : > { %s161_s28 = sshll.u32 %s752_s27, 4  ;;  %s561_s4 = sshra.s32 %s160_s3, 4  ;;  %s162_s28 = int_to_ptr.vmem [resolvable:$true] %s161_s28  ;;  %s562_s4 = int_to_ptr.hbm [resolvable:$true] %s561_s4 }
  0x21   : > { %s568_s5 = scalar_lea.hbm %s562_s4, 16  ;;  %s572_s8 = scalar_lea.hbm %s920_s0, 16 }
  0x22   : > { %p569_p1 = scmp.ne.s32.totalorder %s562_s4, %s568_s5  ;;  %p574_p2 = scmp.lt.s32.totalorder %s572_s8, %s568_s5 }
  0x24   : > { %p576_p3 = pnand %p574_p2, %p569_p1 }
  0x26   : > { %579 = shalt.err (!%p576_p3)
}
  0x27   : > { %s580_s12 = sshra.s32 %s162_s28, 4  ;;  %s591_s18 = scalar_lea.vmem %s752_s27, 64  ;;  %s581_s12 = int_to_ptr.vmem [resolvable:$true] %s580_s12 }
  0x28   : > { %s587_s17 = scalar_lea.vmem %s581_s12, 16 }
  0x29   : > { %p588_p5 = scmp.ne.s32.totalorder %s581_s12, %s587_s17  ;;  %p593_p7 = scmp.lt.s32.totalorder %s591_s18, %s587_s17 }
  0x2b   : > { %p595_p8 = pnand %p593_p7, %p588_p5 }
  0x2d   : > { %598 = shalt.err (!%p595_p8)
}
  0x2e   : > { %s753_s22 = smov 128   ;;  %s754_s23 = smov 8  }
  0x2f   : > { %167 = dma.hbm_to_vmem [thread:$0]  %s160_s3, 256, %s162_s28, [#allocation4], %s753_s22, %s753_s22, %s754_s23  }
  0x30 PF: > { %170 = sbr.rel (!%p820_p4) target bundleno = 70 (0x46), region = 24 }
  0x35   : > { %184 = vsyncadd [#allocation7], 256  ;;  %s755_s29 = smov [#allocation6]   ;;  %s189_s6 = sshll.u32 %s921_s1, 4  ;;  %s190_s6 = int_to_ptr.hbm [resolvable:$true] %s189_s6 }
  0x36   : > { %s191_s30 = sshll.u32 %s755_s29, 4  ;;  %s600_s27 = sshra.s32 %s190_s6, 4  ;;  %s192_s30 = int_to_ptr.vmem [resolvable:$true] %s191_s30  ;;  %s601_s27 = int_to_ptr.hbm [resolvable:$true] %s600_s27 }
  0x37   : > { %s607_s7 = scalar_lea.hbm %s601_s27, 16  ;;  %s611_s28 = scalar_lea.hbm %s921_s1, 16 }
  0x38   : > { %p608_p9 = scmp.ne.s32.totalorder %s601_s27, %s607_s7  ;;  %p613_p10 = scmp.lt.s32.totalorder %s611_s28, %s607_s7 }
  0x3a   : > { %p615_p11 = pnand %p613_p10, %p608_p9 }
  0x3c   : > { %618 = shalt.err (!%p615_p11)
}
  0x3d   : > { %s619_s20 = sshra.s32 %s192_s30, 4  ;;  %s630_s17 = scalar_lea.vmem %s755_s29, 64  ;;  %s620_s20 = int_to_ptr.vmem [resolvable:$true] %s619_s20 }
  0x3e   : > { %s626_s3 = scalar_lea.vmem %s620_s20, 16 }
  0x3f   : > { %p627_p4 = scmp.ne.s32.totalorder %s620_s20, %s626_s3  ;;  %p632_p1 = scmp.lt.s32.totalorder %s630_s17, %s626_s3 }
  0x41   : > { %p634_p2 = pnand %p632_p1, %p627_p4 }
  0x43   : > { %637 = shalt.err (!%p634_p2)
}
  0x44   : > { %s756_s18 = smov 128   ;;  %s757_s22 = smov 8  }
  0x45   : > { %197 = dma.hbm_to_vmem [thread:$0]  %s190_s6, 256, %s192_s30, [#allocation7], %s756_s18, %s756_s18, %s757_s22  }
  0x46 PF: > { %p463_p3 = scmp.ge.s32.totalorder %s750_s16, 1  ;;  %p199_p5 = scmp.lt.s32.totalorder %s750_s16, 3 }
  0x48   : > { %p200_p7 = pnand %p463_p3, %p199_p5 }
  0x49   : > { %s205_s23 = sand.u32 (!%p200_p7), 1, %s738_s13  }
  0x4a   : > { %203 = sbr.rel (%p200_p7) target bundleno = 127 (0x7f), region = 28  ;;  %s464_s4 = sshll.u32 (!%p200_p7), %s205_s23, 5 }
  0x4b   : > { %s206_s5 = scalar_lea.sflag (!%p200_p7), [#allocation4], %s205_s23  ;;  %s209_s29 = scalar_lea.vmem (!%p200_p7), [#allocation3], %s464_s4 }
  0x4f   : > { %704 = dma.done.wait (%p824_p6), %s206_s5, 512  }
  0x50   : > { %706 = vsyncadd (%p824_p6), %s206_s5, 4294966784  ;;  %s216_s30 = scalar_lea.sflag [#allocation7], %s205_s23  ;;  %s219_s6 = scalar_lea.vmem [#allocation6], %s464_s4 }
  0x51   : > { %708 = dma.done.wait (%p824_p6), %s216_s30, 512  }
  0x52   : > { %710 = vsyncadd (%p824_p6), %s216_s30, 4294966784  ;;  %v300_v0 = vlaneseq  ;;  %v758_v1 = vmov 0.0   ;;  %s470_s27 = sshll.u32 %s742_s14, 5  ;;  %v266_v3 = vld [vmem:[%s219_s6] sm:$0xff]  ;;  %v267_v4 = vld [vmem:[%s219_s6 + $0x8] sm:$0xff]  ;;  %s243_s21 = sand.u32 1, %s726_s10  }
  0x53   : > { %261 = vst [vmem:[#allocation2] sm:$0x1] %v758_v1  ;;  %v268_v6 = vld [vmem:[%s219_s6 + $0x10] sm:$0xff]  ;;  %v269_v7 = vld [vmem:[%s219_s6 + $0x18] sm:$0xff]  ;;  %v270_v8 = vmul.f32 2.0, %v266_v3  ;;  %v271_v9 = vmul.f32 2.0, %v267_v4  ;;  %v305_v10 = vstv %s470_s27  ;;  %s344_s12 = scalar_lea.hbm %s922_s2, %s742_s14 }
  0x54   : > { %v301_v2 = vshrl.u32 %v300_v0, 7  ;;  %v262_v11 = vld [vmem:[%s209_s29] sm:$0xff]  ;;  %v263_v12 = vld [vmem:[%s209_s29 + $0x8] sm:$0xff]  ;;  %v272_v13 = vmul.f32 2.0, %v268_v6  ;;  %v273_v14 = vmul.f32 2.0, %v269_v7  ;;  %v264_v15 = vld [vmem:[%s209_s29 + $0x10] sm:$0xff] }
  0x55   : > { %v265_v16 = vld [vmem:[%s209_s29 + $0x18] sm:$0xff]  ;;  %v466_v17 = vadd.f32 -1.0, %v270_v8  ;;  %v467_v18 = vadd.f32 -1.0, %v271_v9  ;;  %v286_v27 = vsub.f32 %v262_v11, %v266_v3  ;;  %v287_v28 = vsub.f32 %v263_v12, %v267_v4  ;;  %s244_s28 = scalar_lea.vmem [#allocation8], %s243_s21  ;;  %s348_s3 = sshll.u32 %s344_s12, 4  ;;  %s349_s3 = int_to_ptr.hbm [resolvable:$true] %s348_s3 }
  0x56   : > { %v302_v5 = vadd.s32 8, %v301_v2  ;;  %v303_v19 = vadd.s32 16, %v301_v2  ;;  %v304_v20 = vadd.s32 24, %v301_v2  ;;  %v468_v21 = vadd.f32 -1.0, %v272_v13  ;;  %s346_s20 = sshll.u32 %s244_s28, 4  ;;  %s336_s17 = scalar_lea.sflag [#allocation5], %s243_s21  ;;  %s347_s20 = int_to_ptr.vmem [resolvable:$true] %s346_s20 }
  0x57   : > { %v469_v22 = vadd.f32 -1.0, %v273_v14  ;;  %v306_v23 = vadd.s32 %v305_v10, %v301_v2  ;;  %v278_v25 = vmul.f32 %v466_v17, %v466_v17  ;;  %v279_v26 = vmul.f32 %v467_v18, %v467_v18  ;;  %s653_s18 = sshra.s32 %s349_s3, 4  ;;  %s659_s5 = scalar_lea.hbm %s922_s2, 2  ;;  %s654_s18 = int_to_ptr.hbm [resolvable:$true] %s653_s18 }
  0x58   : > { %v307_v24 = vadd.s32 %v305_v10, %v302_v5  ;;  %v280_v29 = vmul.f32 %v468_v21, %v468_v21  ;;  %v288_v31 = vsub.f32 %v264_v15, %v268_v6  ;;  %v289_v32 = vsub.f32 %v265_v16, %v269_v7  ;;  %s655_s22 = scalar_lea.hbm %s654_s18, 1  ;;  %p660_p10 = scmp.lt.s32.totalorder %s654_s18, %s922_s2 }
  0x59   : > { %v281_v30 = vmul.f32 %v469_v22, %v469_v22  ;;  %v282_v33 = vadd.f32 1.0, %v278_v25  ;;  %v283_v34 = vadd.f32 1.0, %v279_v26  ;;  %v308_v35 = vadd.s32 %v305_v10, %v303_v19  ;;  %p656_p6 = scmp.ne.s32.totalorder %s654_s18, %s655_s22  ;;  %p661_p11 = scmp.lt.s32.totalorder %s659_s5, %s655_s22 }
  0x5a   : > { %v284_v36 = vadd.f32 1.0, %v280_v29  ;;  %v309_v38 = vadd.s32 %v305_v10, %v304_v20  ;;  %vm310_vm0 = vcmp.lt.s32.totalorder %v306_v23, 16  ;;  %vm311_vm1 = vcmp.lt.s32.totalorder %v307_v24, 16  ;;  %v318_v59 = vld [vmem:[#allocation2] sm:$0x1] }
  0x5b   : > { %v285_v37 = vadd.f32 1.0, %v281_v30  ;;  %v290_v39 = vmul.f32 %v286_v27, %v282_v33  ;;  %v291_v40 = vmul.f32 %v287_v28, %v283_v34  ;;  %vm312_vm2 = vcmp.lt.s32.totalorder %v308_v35, 16  ;;  %p657_p8 = pnand %p656_p6, %p838_p12  ;;  %p662_p4 = por %p661_p11, %p660_p10 }
  0x5c   : > { %v292_v41 = vmul.f32 %v288_v31, %v284_v36  ;;  %vm313_vm3 = vcmp.lt.s32.totalorder %v309_v38, 16 }
  0x5d   : > { %v293_v42 = vmul.f32 %v289_v32, %v285_v37  ;;  %v294_v43 = vmul.f32 %v290_v39, %v286_v27  ;;  %v295_v44 = vmul.f32 %v291_v40, %v287_v28  ;;  %p658_p9 = pneg %p657_p8 }
  0x5e   : > { %v296_v45 = vmul.f32 %v292_v41, %v288_v31 }
  0x5f   : > { %v297_v46 = vmul.f32 %v293_v42, %v289_v32  ;;  %v314_v47 = vsel %vm310_vm0, %v294_v43, 0.0  ;;  %v315_v48 = vsel %vm311_vm1, %v295_v44, 0.0  ;;  %p663_p1 = pnand %p662_p4, %p658_p9 }
  0x60   : > { %v316_v49 = vsel %vm312_vm2, %v296_v45, 0.0  ;;  %v319_v50 = vadd.f32 %v315_v48, %v314_v47 }
  0x61   : > { %v317_v51 = vsel %vm313_vm3, %v297_v46, 0.0 }
  0x62   : > { %v320_v52 = vadd.f32 %v319_v50, %v316_v49 }
  0x64   : > { %v321_v53 = vadd.f32 %v320_v52, %v317_v51 }
  0x66   : > { %v322_v54 = vrot.slane %v321_v53, 4 }
  0x68   : > { %v323_v55 = vadd.f32 %v322_v54, %v321_v53 }
  0x6a   : > { %v324_v56 = vrot.slane %v323_v55, 2 }
  0x6c   : > { %v325_v57 = vadd.f32 %v324_v56, %v323_v55 }
  0x6e   : > { %v326_v58 = vrot.slane %v325_v57, 1 }
  0x70   : > { %v327_v60 = vadd.f32 %v326_v58, %v325_v57 }
  0x72   : > { %v328_v61 = vadd.f32 %v327_v60, %v318_v59 }
  0x74   : > { %329 = vst [vmem:[#allocation2] sm:$0x1] %v328_v61 }
  0x7b   : > { %v333_v62 = vld [vmem:[#allocation2] sm:$0x1] }
  0x7c   : > { %334 = vst [vmem:[%s244_s28] sm:$0x1] %v333_v62 }
  0x7d   : > { %666 = shalt.err (!%p663_p1)
}
  0x7e   : > { %477 = dma.vmem_to_hbm [thread:$0]  (%p838_p12), %s347_s20, 16, %s349_s3, %s336_s17  }
  0x7f PF: > { %s360_s30 = sand.u32 1, %s722_s9   ;;  %p480_p2 = pnand %p448_p0, %p842_p13 }
  0x80   : > { %s361_s6 = scalar_lea.sflag [#allocation5], %s360_s30 }
  0x81   : > { %p481_p3 = pneg %p480_p2 }
  0x83   : > { %712 = dma.done.wait (%p481_p3), %s361_s6, 16  }
  0x84   : > { %714 = vsyncadd (%p481_p3), %s361_s6, 4294967280  ;;  %s21_s16 = sadd.s32 1, %s750_s16   ;;  %s927_s9 = smov %s726_s10 }
  0x85   : > { %p18_p5 = scmp.ge.s32.totalorder %s21_s16, 4   ;;  %s928_s10 = smov %s730_s11 }
  0x86   : > { %s929_s11 = smov %s832_s24  ;;  %s930_s12 = smov %s738_s13 }
  0x87   : > { %s910_s13 = smov 0   ;;  %s931_s14 = smov %s746_s15 }
  0x88   : > { %s932_s15 = smov %s934_s19  ;;  %20 = sbr.rel (!%p18_p5) target bundleno = 9 (0x9), region = 94 }
  0x8d   :  { %366 = vsyncpa [#allocation4], 1 }
  0x8e   :  { %368 = vsyncpa [#allocation4 + $0x1], 1 }
  0x8f   :  { %369 = vsyncpa [#allocation7], 1 }
  0x90   :  { %371 = vsyncpa [#allocation7 + $0x1], 1 }
  0x91   :  { %372 = vsyncpa [#allocation5], 1 }
  0x92   :  { %374 = vsyncpa [#allocation5 + $0x1], 1 }

</bundles_post_ra>
